<compile_context>
chip_gen: v5e
topology: v5e:2x2
jax: 0.10.0
libtpu: 0.0.40
codegen_flags: <defaults>
</compile_context>

<pallas_src>
import functools

import jax
import jax.numpy as jnp
from jax.experimental import pallas as pl
from jax.experimental.pallas import tpu as pltpu


# ---------------------------------------------------------------------------
# Shared in-kernel math: conv1(+folded BN) -> h_swish -> conv_h/conv_w ->
# sigmoid, starting from the (C, H+W) tensor of coordinate *sums*.
# ---------------------------------------------------------------------------
def _attn_math(pooled_sums, w1, b1, wh, bh, ww, bw, *, H, W):
    # conv1 on the pooled means; the 1/W, 1/H scale is per-column of (H+W), so
    # it commutes with the matmul and is applied afterwards on (MIP, H+W).
    z = jnp.dot(w1, pooled_sums, preferred_element_type=jnp.float32)   # (MIP, S)
    zh = z[:, :H] * (1.0 / W) + b1                                     # (MIP, H)
    zw = z[:, H:] * (1.0 / H) + b1                                     # (MIP, W)
    # h_swish: y * relu6(y + 3) / 6
    zh = zh * (jnp.clip(zh + 3.0, 0.0, 6.0) * (1.0 / 6.0))
    zw = zw * (jnp.clip(zw + 3.0, 0.0, 6.0) * (1.0 / 6.0))
    a_h = jax.nn.sigmoid(jnp.dot(wh, zh, preferred_element_type=jnp.float32) + bh)
    a_w = jax.nn.sigmoid(jnp.dot(ww, zw, preferred_element_type=jnp.float32) + bw)
    return a_h, a_w                                                    # (C,H),(C,W)


# ---------------------------------------------------------------------------
# Fused per-batch kernel: x is read once, out written once.
# ---------------------------------------------------------------------------
def _fused_kernel(x_ref, p_ref, w1_ref, b1_ref, wh_ref, bh_ref, ww_ref, bw_ref,
                  eh_ref, ew_ref, o_ref, *, H, W):
    x = x_ref[0]                                                       # (C, HW)
    # Coordinate pooling on the MXU: x (C,HW) @ 0/1 pooling matrix (HW, H+W)
    # gives the concatenated [sum-over-W | sum-over-H] tensor, f32 accumulated.
    pooled = jnp.dot(x, p_ref[...], preferred_element_type=jnp.float32)  # (C, S)
    a_h, a_w = _attn_math(pooled, w1_ref[...], b1_ref[...], wh_ref[...],
                          bh_ref[...], ww_ref[...], bw_ref[...], H=H, W=W)
    # Broadcast a_h/a_w to the flattened lane-dense spatial axis with two MXU
    # matmuls against 0/1 selection matrices (no in-kernel reshape/relayout).
    sel_dt = eh_ref.dtype
    mh = jnp.dot(a_h.astype(sel_dt), eh_ref[...], preferred_element_type=jnp.float32)
    mw = jnp.dot(a_w.astype(sel_dt), ew_ref[...], preferred_element_type=jnp.float32)
    o_ref[0] = (x.astype(jnp.float32) * mh * mw).astype(o_ref.dtype)


# ---------------------------------------------------------------------------
# Two-phase fallback kernels (very large C*HW).
# ---------------------------------------------------------------------------
def _pool_kernel(x_ref, p_ref, pooled_ref):
    pooled_ref[0] = jnp.dot(x_ref[0], p_ref[...],
                            preferred_element_type=jnp.float32)


def _attn_kernel(pooled_ref, w1_ref, b1_ref, wh_ref, bh_ref, ww_ref, bw_ref,
                 a_ref, *, H, W):
    a_h, a_w = _attn_math(pooled_ref[0], w1_ref[...], b1_ref[...], wh_ref[...],
                          bh_ref[...], ww_ref[...], bw_ref[...], H=H, W=W)
    a_ref[0, :, :H] = a_h
    a_ref[0, :, H:] = a_w


def _apply_kernel(x_ref, a_ref, eh_ref, ew_ref, o_ref, *, H):
    a = a_ref[...]                                                     # (rb, S)
    sel_dt = eh_ref.dtype
    mh = jnp.dot(a[:, :H].astype(sel_dt), eh_ref[...],
                 preferred_element_type=jnp.float32)
    mw = jnp.dot(a[:, H:].astype(sel_dt), ew_ref[...],
                 preferred_element_type=jnp.float32)
    o_ref[...] = (x_ref[...].astype(jnp.float32) * mh * mw).astype(o_ref.dtype)


# ---------------------------------------------------------------------------
# Host-side helpers.
# ---------------------------------------------------------------------------
def _vmem_limit_bytes():
    """Generation-aware VMEM request with ~20% headroom for compiler scratch:
    ~51 MiB on v7x (64 MiB physical), ~102 MiB on v5e/v6e (128 MiB physical)."""
    cap = 64 * 1024 * 1024
    try:
        cap = int(pltpu.get_tpu_info().vmem_capacity_bytes)
    except Exception:
        pass
    return max(32 * 1024 * 1024, int(cap * 0.8))


def _pick_row_block(rows, row_bytes, budget_bytes):
    """Largest row tile under `budget_bytes` satisfying the (8,128) sublane
    rule (multiple of 8, or the full extent). Used with a cdiv grid, so it
    need not divide `rows` — Pallas masks the edge block."""
    rb = (budget_bytes // max(row_bytes, 1)) // 8 * 8
    rb = max(8, rb)
    return rows if rb >= rows else rb


def coord_attention(x, w1, b1, bn_gamma, bn_beta, bn_mean, bn_var,
                    wh, bh, ww, bw, eps=1e-5, force_two_phase=False):
    """CoorAttention forward pass (NCHW input, eval-mode BatchNorm)."""
    N, C, H, W = x.shape
    MIP = w1.shape[0]
    HW, S = H * W, H + W
    assert w1.shape == (MIP, C)
    assert wh.shape == (C, MIP) and ww.shape == (C, MIP), "module requires inp == oup"
    f32 = jnp.float32
    itemsize = x.dtype.itemsize

    vmem_limit = _vmem_limit_bytes()
    usable = int(vmem_limit * 0.7)

    # --- host-side parameter folds (eval-mode BN + conv1 bias) --------------
    bns = bn_gamma.astype(f32) / jnp.sqrt(bn_var.astype(f32) + eps)          # (MIP,)
    w1f = w1.astype(f32) * bns[:, None]                                      # (MIP, C)
    b1f = (bns * b1.astype(f32) + bn_beta.astype(f32)
           - bn_mean.astype(f32) * bns)[:, None]                             # (MIP, 1)
    whf, bh2 = wh.astype(f32), bh.astype(f32)[:, None]                       # (C,MIP),(C,1)
    wwf, bw2 = ww.astype(f32), bw.astype(f32)[:, None]

    # --- small 0/1 constant matrices for MXU pooling / broadcast ------------
    # Exact in bf16; kept f32 when x is f32 so the f32 path stays bit-tight.
    sel_dtype = jnp.bfloat16 if itemsize < 4 else f32
    sel_item = jnp.dtype(sel_dtype).itemsize
    s_idx = jnp.arange(HW, dtype=jnp.int32)
    ph = (s_idx[:, None] // W == jnp.arange(H, dtype=jnp.int32)[None, :]).astype(f32)
    pw = (s_idx[:, None] % W == jnp.arange(W, dtype=jnp.int32)[None, :]).astype(f32)
    pool_mat = jnp.concatenate([ph, pw], axis=1).astype(x.dtype)             # (HW, S)
    e_h = ph.T.astype(sel_dtype)                                             # (H, HW)
    e_w = pw.T.astype(sel_dtype)                                             # (W, HW)

    # Lane-dense spatial axis: free reshape of contiguous NCHW.
    x_flat = x.reshape(N, C, HW)

    # --- fused vs. two-phase decision (per-batch VMEM footprint estimate) ---
    xo_bytes = C * HW * itemsize                          # one x tile / one out tile
    const_bytes = HW * S * itemsize + S * HW * sel_item   # pool_mat + e_h + e_w
    weight_bytes = 4 * (MIP * C + MIP + 2 * C * MIP + 2 * C)
    temp_bytes = 3 * C * HW * 4                           # in-kernel f32 intermediates
    fused_bytes = 2 * 2 * xo_bytes + 2 * const_bytes + 2 * weight_bytes + temp_bytes

    if not force_two_phase and fused_bytes <= usable:
        # ------------------------- fused path --------------------------------
        out = pl.pallas_call(
            functools.partial(_fused_kernel, H=H, W=W),
            out_shape=jax.ShapeDtypeStruct((N, C, HW), x.dtype),
            grid_spec=pltpu.PrefetchScalarGridSpec(
                num_scalar_prefetch=0,
                grid=(N,),
                in_specs=[
                    pl.BlockSpec((1, C, HW), lambda n: (n, 0, 0)),   # x (lane-dense)
                    pl.BlockSpec((HW, S), lambda n: (0, 0)),         # pooling matrix
                    pl.BlockSpec((MIP, C), lambda n: (0, 0)),        # conv1 w (BN folded)
                    pl.BlockSpec((MIP, 1), lambda n: (0, 0)),        # conv1 b (BN folded)
                    pl.BlockSpec((C, MIP), lambda n: (0, 0)),        # conv_h w
                    pl.BlockSpec((C, 1), lambda n: (0, 0)),          # conv_h b
                    pl.BlockSpec((C, MIP), lambda n: (0, 0)),        # conv_w w
                    pl.BlockSpec((C, 1), lambda n: (0, 0)),          # conv_w b
                    pl.BlockSpec((H, HW), lambda n: (0, 0)),         # broadcast sel (H)
                    pl.BlockSpec((W, HW), lambda n: (0, 0)),         # broadcast sel (W)
                ],
                out_specs=pl.BlockSpec((1, C, HW), lambda n: (n, 0, 0)),
            ),
            compiler_params=pltpu.CompilerParams(
                dimension_semantics=("parallel",),
                vmem_limit_bytes=vmem_limit),
        )(x_flat, pool_mat, w1f, b1f, whf, bh2, wwf, bw2, e_h, e_w)
        return out.reshape(N, C, H, W)

    # -------------------- two-phase fallback (large C*HW) --------------------
    # Phase 1a: coordinate pooling, tiled over (N, C-tiles) for parallelism and
    # bounded VMEM even when a full (C, HW) slab would not fit.
    pool_budget = min(16 << 20, max(1 << 20, (usable - 2 * HW * S * itemsize) // 4))
    cb = _pick_row_block(C, HW * itemsize, pool_budget)
    pooled = pl.pallas_call(
        _pool_kernel,
        out_shape=jax.ShapeDtypeStruct((N, C, S), f32),
        grid_spec=pltpu.PrefetchScalarGridSpec(
            num_scalar_prefetch=0,
            grid=(N, pl.cdiv(C, cb)),
            in_specs=[pl.BlockSpec((1, cb, HW), lambda n, c: (n, c, 0)),
                      pl.BlockSpec((HW, S), lambda n, c: (0, 0))],
            out_specs=pl.BlockSpec((1, cb, S), lambda n, c: (n, c, 0)),
        ),
        compiler_params=pltpu.CompilerParams(
            dimension_semantics=("parallel", "parallel"),
            vmem_limit_bytes=vmem_limit),
    )(x_flat, pool_mat)

    # Phase 1b: tiny conv chain -> ONE combined (N, C, H+W) attention tensor.
    attn = pl.pallas_call(
        functools.partial(_attn_kernel, H=H, W=W),
        out_shape=jax.ShapeDtypeStruct((N, C, S), f32),
        grid_spec=pltpu.PrefetchScalarGridSpec(
            num_scalar_prefetch=0,
            grid=(N,),
            in_specs=[pl.BlockSpec((1, C, S), lambda n: (n, 0, 0)),
                      pl.BlockSpec((MIP, C), lambda n: (0, 0)),
                      pl.BlockSpec((MIP, 1), lambda n: (0, 0)),
                      pl.BlockSpec((C, MIP), lambda n: (0, 0)),
                      pl.BlockSpec((C, 1), lambda n: (0, 0)),
                      pl.BlockSpec((C, MIP), lambda n: (0, 0)),
                      pl.BlockSpec((C, 1), lambda n: (0, 0))],
            out_specs=pl.BlockSpec((1, C, S), lambda n: (n, 0, 0)),
        ),
        compiler_params=pltpu.CompilerParams(
            dimension_semantics=("parallel",),
            vmem_limit_bytes=vmem_limit),
    )(pooled, w1f, b1f, whf, bh2, wwf, bw2)

    # Phase 2: lane-dense apply over large, VMEM-budgeted row tiles of N*C.
    rows = N * C
    x2 = x_flat.reshape(rows, HW)
    a2 = attn.reshape(rows, S)
    e_bytes = S * HW * sel_item
    row_budget = min(16 << 20, max(1 << 20, (usable - 2 * e_bytes) // 5))
    rb = _pick_row_block(rows, HW * itemsize, row_budget)

    out2 = pl.pallas_call(
        functools.partial(_apply_kernel, H=H),
        out_shape=jax.ShapeDtypeStruct((rows, HW), x.dtype),
        grid_spec=pltpu.PrefetchScalarGridSpec(
            num_scalar_prefetch=0,
            grid=(pl.cdiv(rows, rb),),
            in_specs=[pl.BlockSpec((rb, HW), lambda r: (r, 0)),      # x rows (lane-dense)
                      pl.BlockSpec((rb, S), lambda r: (r, 0)),       # combined a rows
                      pl.BlockSpec((H, HW), lambda r: (0, 0)),       # broadcast sel (H)
                      pl.BlockSpec((W, HW), lambda r: (0, 0))],      # broadcast sel (W)
            out_specs=pl.BlockSpec((rb, HW), lambda r: (r, 0)),
        ),
        compiler_params=pltpu.CompilerParams(
            dimension_semantics=("parallel",),
            vmem_limit_bytes=vmem_limit),
    )(x2, a2, e_h, e_w)
    return out2.reshape(N, C, H, W)


def reference(x, w1, b1, gamma, beta, mean, var, wh, bh, ww, bw, eps=1e-5):
    """Pure-JAX reference mirroring the PyTorch forward (eval-mode BN)."""
    N, C, H, W = x.shape
    x_h = jnp.mean(x, axis=3)                                # (N, C, H)
    x_w = jnp.mean(x, axis=2)                                # (N, C, W)
    y = jnp.concatenate([x_h, x_w], axis=2)                  # (N, C, H+W)
    z = jnp.einsum('oc,ncs->nos', w1, y) + b1[None, :, None]
    z = ((z - mean[None, :, None]) / jnp.sqrt(var[None, :, None] + eps)
         * gamma[None, :, None] + beta[None, :, None])
    z = z * jnp.clip(z + 3.0, 0.0, 6.0) / 6.0                # h_swish
    zh, zw = z[..., :H], z[..., H:]
    a_h = jax.nn.sigmoid(jnp.einsum('om,nms->nos', wh, zh) + bh[None, :, None])
    a_w = jax.nn.sigmoid(jnp.einsum('om,nms->nos', ww, zw) + bw[None, :, None])
    return x * a_w[:, :, None, :] * a_h[:, :, :, None]


if __name__ == "__main__":
    # Shapes consistent with the module: inp == oup == C (required by the final
    # broadcasted multiply), reduction=32 -> mip = max(8, C // 32) = 8.
    N, C, H, W = 2, 4, 16, 16
    MIP = max(8, C // 32)

    key = jax.random.PRNGKey(0)
    ks = jax.random.split(key, 11)

    x = jax.random.normal(ks[0], (N, C, H, W), dtype=jnp.float32)
    w1 = 0.2 * jax.random.normal(ks[1], (MIP, C), jnp.float32)
    b1 = 0.1 * jax.random.normal(ks[2], (MIP,), jnp.float32)
    gamma = 1.0 + 0.1 * jax.random.normal(ks[3], (MIP,), jnp.float32)
    beta = 0.1 * jax.random.normal(ks[4], (MIP,), jnp.float32)
    run_mean = 0.1 * jax.random.normal(ks[5], (MIP,), jnp.float32)
    run_var = 1.0 + 0.5 * jnp.abs(jax.random.normal(ks[6], (MIP,), jnp.float32))
    wh = 0.2 * jax.random.normal(ks[7], (C, MIP), jnp.float32)
    bh = 0.1 * jax.random.normal(ks[8], (C,), jnp.float32)
    ww = 0.2 * jax.random.normal(ks[9], (C, MIP), jnp.float32)
    bw = 0.1 * jax.random.normal(ks[10], (C,), jnp.float32)

    ref = reference(x, w1, b1, gamma, beta, run_mean, run_var, wh, bh, ww, bw)

    # Primary (fused) path.
    out = coord_attention(x, w1, b1, gamma, beta, run_mean, run_var, wh, bh, ww, bw)
    out = jax.block_until_ready(out)
    assert out.shape == (N, C, H, W)
    assert jnp.allclose(out, ref, atol=1e-5, rtol=1e-5), "fused path mismatch"

    # Also exercise the two-phase fallback path (used for very large C*H*W).
    out2 = coord_attention(x, w1, b1, gamma, beta, run_mean, run_var, wh, bh, ww, bw,
                           force_two_phase=True)
    out2 = jax.block_until_ready(out2)
    assert jnp.allclose(out2, ref, atol=1e-5, rtol=1e-5), "two-phase path mismatch"

    print("KERNEL_OK")
</pallas_src>

<mosaic_0001>
module attributes {stable_mosaic.version = 11 : i64} {
  func.func @_fused_kernel(%arg0: i32, %arg1: memref<1x4x256xf32, #tpu.memory_space<vmem>>, %arg2: memref<256x32xf32, #tpu.memory_space<vmem>>, %arg3: memref<8x4xf32, #tpu.memory_space<vmem>>, %arg4: memref<8x1xf32, #tpu.memory_space<vmem>>, %arg5: memref<4x8xf32, #tpu.memory_space<vmem>>, %arg6: memref<4x1xf32, #tpu.memory_space<vmem>>, %arg7: memref<4x8xf32, #tpu.memory_space<vmem>>, %arg8: memref<4x1xf32, #tpu.memory_space<vmem>>, %arg9: memref<16x256xf32, #tpu.memory_space<vmem>>, %arg10: memref<16x256xf32, #tpu.memory_space<vmem>>, %arg11: memref<1x4x256xf32, #tpu.memory_space<vmem>>) attributes {dimension_semantics = [#tpu.dimension_semantics<parallel>], iteration_bounds = array<i64: 2>, scalar_prefetch = 0 : i64, scratch_operands = 0 : i64, tpu.core_type = #tpu.core_type<tc>, window_params = [{transform_indices = @transform_0, window_bounds = array<i64: 1, 4, 256>}, {pipeline_mode = #tpu.pipeline_mode<synchronous>, transform_indices = @transform_1, window_bounds = array<i64: 256, 32>}, {pipeline_mode = #tpu.pipeline_mode<synchronous>, transform_indices = @transform_2, window_bounds = array<i64: 8, 4>}, {pipeline_mode = #tpu.pipeline_mode<synchronous>, transform_indices = @transform_3, window_bounds = array<i64: 8, 1>}, {pipeline_mode = #tpu.pipeline_mode<synchronous>, transform_indices = @transform_4, window_bounds = array<i64: 4, 8>}, {pipeline_mode = #tpu.pipeline_mode<synchronous>, transform_indices = @transform_5, window_bounds = array<i64: 4, 1>}, {pipeline_mode = #tpu.pipeline_mode<synchronous>, transform_indices = @transform_6, window_bounds = array<i64: 4, 8>}, {pipeline_mode = #tpu.pipeline_mode<synchronous>, transform_indices = @transform_7, window_bounds = array<i64: 4, 1>}, {pipeline_mode = #tpu.pipeline_mode<synchronous>, transform_indices = @transform_8, window_bounds = array<i64: 16, 256>}, {pipeline_mode = #tpu.pipeline_mode<synchronous>, transform_indices = @transform_9, window_bounds = array<i64: 16, 256>}, {transform_indices = @transform_10, window_bounds = array<i64: 1, 4, 256>}]} {
    %c0 = arith.constant 0 : index
    %c0_0 = arith.constant 0 : index
    %c0_1 = arith.constant 0 : index
    %0 = vector.load %arg1[%c0, %c0_0, %c0_1] : memref<1x4x256xf32, #tpu.memory_space<vmem>>, vector<1x4x256xf32>
    %1 = vector.shape_cast %0 : vector<1x4x256xf32> to vector<4x256xf32>
    %c0_2 = arith.constant 0 : index
    %c0_3 = arith.constant 0 : index
    %2 = vector.load %arg2[%c0_2, %c0_3] : memref<256x32xf32, #tpu.memory_space<vmem>>, vector<256x32xf32>
    %cst = arith.constant dense<0.000000e+00> : vector<4x32xf32>
    %3 = tpu.matmul %1, %2, %cst {dimension_numbers = #tpu.dot_dimension_numbers<[1], [0], [0], [1], [0, 0, 1, 1], [], []>} : vector<4x256xf32>, vector<256x32xf32>, vector<4x32xf32> -> vector<4x32xf32>
    %c0_4 = arith.constant 0 : index
    %c0_5 = arith.constant 0 : index
    %4 = vector.load %arg3[%c0_4, %c0_5] : memref<8x4xf32, #tpu.memory_space<vmem>>, vector<8x4xf32>
    %c0_6 = arith.constant 0 : index
    %c0_7 = arith.constant 0 : index
    %5 = vector.load %arg4[%c0_6, %c0_7] : memref<8x1xf32, #tpu.memory_space<vmem>>, vector<8x1xf32>
    %c0_8 = arith.constant 0 : index
    %c0_9 = arith.constant 0 : index
    %6 = vector.load %arg5[%c0_8, %c0_9] : memref<4x8xf32, #tpu.memory_space<vmem>>, vector<4x8xf32>
    %c0_10 = arith.constant 0 : index
    %c0_11 = arith.constant 0 : index
    %7 = vector.load %arg6[%c0_10, %c0_11] : memref<4x1xf32, #tpu.memory_space<vmem>>, vector<4x1xf32>
    %c0_12 = arith.constant 0 : index
    %c0_13 = arith.constant 0 : index
    %8 = vector.load %arg7[%c0_12, %c0_13] : memref<4x8xf32, #tpu.memory_space<vmem>>, vector<4x8xf32>
    %c0_14 = arith.constant 0 : index
    %c0_15 = arith.constant 0 : index
    %9 = vector.load %arg8[%c0_14, %c0_15] : memref<4x1xf32, #tpu.memory_space<vmem>>, vector<4x1xf32>
    %cst_16 = arith.constant dense<0.000000e+00> : vector<8x32xf32>
    %10 = tpu.matmul %4, %3, %cst_16 {dimension_numbers = #tpu.dot_dimension_numbers<[1], [0], [0], [1], [0, 0, 1, 1], [], []>} : vector<8x4xf32>, vector<4x32xf32>, vector<8x32xf32> -> vector<8x32xf32>
    %11 = vector.extract_strided_slice %10 {offsets = [0, 0], sizes = [8, 16], strides = [1, 1]} : vector<8x32xf32> to vector<8x16xf32>
    %cst_17 = arith.constant 6.250000e-02 : f32
    %12 = vector.broadcast %cst_17 : f32 to vector<8x16xf32>
    %13 = arith.mulf %11, %12 : vector<8x16xf32>
    %14 = vector.broadcast %5 : vector<8x1xf32> to vector<8x16xf32>
    %15 = arith.addf %13, %14 : vector<8x16xf32>
    %16 = vector.extract_strided_slice %10 {offsets = [0, 16], sizes = [8, 16], strides = [1, 1]} : vector<8x32xf32> to vector<8x16xf32>
    %cst_18 = arith.constant 6.250000e-02 : f32
    %17 = vector.broadcast %cst_18 : f32 to vector<8x16xf32>
    %18 = arith.mulf %16, %17 : vector<8x16xf32>
    %19 = vector.broadcast %5 : vector<8x1xf32> to vector<8x16xf32>
    %20 = arith.addf %18, %19 : vector<8x16xf32>
    %cst_19 = arith.constant 3.000000e+00 : f32
    %21 = vector.broadcast %cst_19 : f32 to vector<8x16xf32>
    %22 = arith.addf %15, %21 : vector<8x16xf32>
    %cst_20 = arith.constant 0.000000e+00 : f32
    %cst_21 = arith.constant 6.000000e+00 : f32
    %23 = vector.broadcast %cst_20 : f32 to vector<8x16xf32>
    %24 = arith.maximumf %23, %22 : vector<8x16xf32>
    %25 = vector.broadcast %cst_21 : f32 to vector<8x16xf32>
    %26 = arith.minimumf %25, %24 : vector<8x16xf32>
    %cst_22 = arith.constant 0.166666672 : f32
    %27 = vector.broadcast %cst_22 : f32 to vector<8x16xf32>
    %28 = arith.mulf %26, %27 : vector<8x16xf32>
    %29 = arith.mulf %15, %28 : vector<8x16xf32>
    %cst_23 = arith.constant 3.000000e+00 : f32
    %30 = vector.broadcast %cst_23 : f32 to vector<8x16xf32>
    %31 = arith.addf %20, %30 : vector<8x16xf32>
    %cst_24 = arith.constant 0.000000e+00 : f32
    %cst_25 = arith.constant 6.000000e+00 : f32
    %32 = vector.broadcast %cst_24 : f32 to vector<8x16xf32>
    %33 = arith.maximumf %32, %31 : vector<8x16xf32>
    %34 = vector.broadcast %cst_25 : f32 to vector<8x16xf32>
    %35 = arith.minimumf %34, %33 : vector<8x16xf32>
    %cst_26 = arith.constant 0.166666672 : f32
    %36 = vector.broadcast %cst_26 : f32 to vector<8x16xf32>
    %37 = arith.mulf %35, %36 : vector<8x16xf32>
    %38 = arith.mulf %20, %37 : vector<8x16xf32>
    %cst_27 = arith.constant dense<0.000000e+00> : vector<4x16xf32>
    %39 = tpu.matmul %6, %29, %cst_27 {dimension_numbers = #tpu.dot_dimension_numbers<[1], [0], [0], [1], [0, 0, 1, 1], [], []>} : vector<4x8xf32>, vector<8x16xf32>, vector<4x16xf32> -> vector<4x16xf32>
    %40 = vector.broadcast %7 : vector<4x1xf32> to vector<4x16xf32>
    %41 = arith.addf %39, %40 : vector<4x16xf32>
    %42 = arith.negf %41 : vector<4x16xf32>
    %43 = math.exp %42 : vector<4x16xf32>
    %cst_28 = arith.constant 1.000000e+00 : f32
    %44 = vector.broadcast %cst_28 : f32 to vector<4x16xf32>
    %45 = arith.addf %44, %43 : vector<4x16xf32>
    %46 = arith.divf %44, %45 : vector<4x16xf32>
    %cst_29 = arith.constant dense<0.000000e+00> : vector<4x16xf32>
    %47 = tpu.matmul %8, %38, %cst_29 {dimension_numbers = #tpu.dot_dimension_numbers<[1], [0], [0], [1], [0, 0, 1, 1], [], []>} : vector<4x8xf32>, vector<8x16xf32>, vector<4x16xf32> -> vector<4x16xf32>
    %48 = vector.broadcast %9 : vector<4x1xf32> to vector<4x16xf32>
    %49 = arith.addf %47, %48 : vector<4x16xf32>
    %50 = arith.negf %49 : vector<4x16xf32>
    %51 = math.exp %50 : vector<4x16xf32>
    %cst_30 = arith.constant 1.000000e+00 : f32
    %52 = vector.broadcast %cst_30 : f32 to vector<4x16xf32>
    %53 = arith.addf %52, %51 : vector<4x16xf32>
    %54 = arith.divf %52, %53 : vector<4x16xf32>
    %c0_31 = arith.constant 0 : index
    %c0_32 = arith.constant 0 : index
    %55 = vector.load %arg9[%c0_31, %c0_32] : memref<16x256xf32, #tpu.memory_space<vmem>>, vector<16x256xf32>
    %cst_33 = arith.constant dense<0.000000e+00> : vector<4x256xf32>
    %56 = tpu.matmul %46, %55, %cst_33 {dimension_numbers = #tpu.dot_dimension_numbers<[1], [0], [0], [1], [0, 0, 1, 1], [], []>} : vector<4x16xf32>, vector<16x256xf32>, vector<4x256xf32> -> vector<4x256xf32>
    %c0_34 = arith.constant 0 : index
    %c0_35 = arith.constant 0 : index
    %57 = vector.load %arg10[%c0_34, %c0_35] : memref<16x256xf32, #tpu.memory_space<vmem>>, vector<16x256xf32>
    %cst_36 = arith.constant dense<0.000000e+00> : vector<4x256xf32>
    %58 = tpu.matmul %54, %57, %cst_36 {dimension_numbers = #tpu.dot_dimension_numbers<[1], [0], [0], [1], [0, 0, 1, 1], [], []>} : vector<4x16xf32>, vector<16x256xf32>, vector<4x256xf32> -> vector<4x256xf32>
    %59 = arith.mulf %1, %56 : vector<4x256xf32>
    %60 = arith.mulf %59, %58 : vector<4x256xf32>
    %c0_37 = arith.constant 0 : index
    %c0_38 = arith.constant 0 : index
    %c0_39 = arith.constant 0 : index
    %61 = vector.load %arg11[%c0_37, %c0_38, %c0_39] : memref<1x4x256xf32, #tpu.memory_space<vmem>>, vector<1x4x256xf32>
    %62 = vector.shape_cast %61 : vector<1x4x256xf32> to vector<4x256xf32>
    %63 = vector.shape_cast %60 : vector<4x256xf32> to vector<1x4x256xf32>
    tpu.vector_store %arg11[%c0_37, %c0_38, %c0_39], %63 {strides = array<i32>} : memref<1x4x256xf32, #tpu.memory_space<vmem>>, vector<1x4x256xf32>,
    return
  }
  func.func @transform_0(%arg0: i32) -> (i32, i32, i32) {
    %c0_i32 = arith.constant 0 : i32
    %c0_i32_0 = arith.constant 0 : i32
    %c0_i32_1 = arith.constant 0 : i32
    return %arg0, %c0_i32, %c0_i32_0 : i32, i32, i32
  }
  func.func @transform_1(%arg0: i32) -> (i32, i32) {
    %c0_i32 = arith.constant 0 : i32
    %c0_i32_0 = arith.constant 0 : i32
    %c0_i32_1 = arith.constant 0 : i32
    return %c0_i32, %c0_i32_0 : i32, i32
  }
  func.func @transform_2(%arg0: i32) -> (i32, i32) {
    %c0_i32 = arith.constant 0 : i32
    %c0_i32_0 = arith.constant 0 : i32
    %c0_i32_1 = arith.constant 0 : i32
    return %c0_i32, %c0_i32_0 : i32, i32
  }
  func.func @transform_3(%arg0: i32) -> (i32, i32) {
    %c0_i32 = arith.constant 0 : i32
    %c0_i32_0 = arith.constant 0 : i32
    %c0_i32_1 = arith.constant 0 : i32
    return %c0_i32, %c0_i32_0 : i32, i32
  }
  func.func @transform_4(%arg0: i32) -> (i32, i32) {
    %c0_i32 = arith.constant 0 : i32
    %c0_i32_0 = arith.constant 0 : i32
    %c0_i32_1 = arith.constant 0 : i32
    return %c0_i32, %c0_i32_0 : i32, i32
  }
  func.func @transform_5(%arg0: i32) -> (i32, i32) {
    %c0_i32 = arith.constant 0 : i32
    %c0_i32_0 = arith.constant 0 : i32
    %c0_i32_1 = arith.constant 0 : i32
    return %c0_i32, %c0_i32_0 : i32, i32
  }
  func.func @transform_6(%arg0: i32) -> (i32, i32) {
    %c0_i32 = arith.constant 0 : i32
    %c0_i32_0 = arith.constant 0 : i32
    %c0_i32_1 = arith.constant 0 : i32
    return %c0_i32, %c0_i32_0 : i32, i32
  }
  func.func @transform_7(%arg0: i32) -> (i32, i32) {
    %c0_i32 = arith.constant 0 : i32
    %c0_i32_0 = arith.constant 0 : i32
    %c0_i32_1 = arith.constant 0 : i32
    return %c0_i32, %c0_i32_0 : i32, i32
  }
  func.func @transform_8(%arg0: i32) -> (i32, i32) {
    %c0_i32 = arith.constant 0 : i32
    %c0_i32_0 = arith.constant 0 : i32
    %c0_i32_1 = arith.constant 0 : i32
    return %c0_i32, %c0_i32_0 : i32, i32
  }
  func.func @transform_9(%arg0: i32) -> (i32, i32) {
    %c0_i32 = arith.constant 0 : i32
    %c0_i32_0 = arith.constant 0 : i32
    %c0_i32_1 = arith.constant 0 : i32
    return %c0_i32, %c0_i32_0 : i32, i32
  }
  func.func @transform_10(%arg0: i32) -> (i32, i32, i32) {
    %c0_i32 = arith.constant 0 : i32
    %c0_i32_0 = arith.constant 0 : i32
    %c0_i32_1 = arith.constant 0 : i32
    return %arg0, %c0_i32, %c0_i32_0 : i32, i32, i32
  }
}

</mosaic_0001>

<bundles_post_ra>
// kernel: tpu_custom_call.1
= control target key start
LH: loop header
LB: loop body
LE: loop exit
PB: predicated region body
PF: predicated region fallthrough
CT: control target
= control target key end

     0   :  { %15 = vsyncpa [#allocation3], 0  ;;  %s1196_s0 = inlined_call_operand.vmem [shape: f32[2,4,256], index: 0, kind: input, shape index: {}]   ;;  %s1197_s1 = inlined_call_operand.vmem [shape: f32[256,32], index: 1, kind: input, shape index: {}]   ;;  %s1198_s2 = inlined_call_operand.vmem [shape: f32[8,4], index: 2, kind: input, shape index: {}]   ;;  %s1199_s3 = inlined_call_operand.vmem [shape: f32[8,1], index: 3, kind: input, shape index: {}]   ;;  %s1200_s4 = inlined_call_operand.vmem [shape: f32[4,8], index: 4, kind: input, shape index: {}]   ;;  %s1201_s5 = inlined_call_operand.vmem [shape: f32[4,1], index: 5, kind: input, shape index: {}]   ;;  %s1202_s6 = inlined_call_operand.vmem [shape: f32[4,8], index: 6, kind: input, shape index: {}]   ;;  %s1203_s7 = inlined_call_operand.vmem [shape: f32[4,1], index: 7, kind: input, shape index: {}]   ;;  %s1204_s8 = inlined_call_operand.vmem [shape: f32[16,256], index: 8, kind: input, shape index: {}]   ;;  %s1205_s9 = inlined_call_operand.vmem [shape: f32[16,256], index: 9, kind: input, shape index: {}]   ;;  %s1206_s10 = inlined_call_operand.hbm [shape: f32[2,4,256], index: 10, kind: output, shape index: {}]  }
   0x1   :  { %17 = vsyncpa [#allocation3 + $0x1], 0  ;;  %s962_s13 = smov 0   ;;  %s964_s14 = smov 0  }
   0x2   :  { %s966_s15 = smov 0   ;;  %s968_s16 = smov 0  }
   0x3 LB: > { %s983_s17 = sadd.s32 4294967295, %s903_s16   ;;  %s766_s18 = sadd.s32 4294967294, %s903_s16   ;;  %s903_s16 = sphi %s968_s16, %s1214_s16   ;;  %s899_s15 = sphi %s966_s15, %s1213_s15   ;;  %s895_s14 = sphi %s964_s14, %s1212_s14   ;;  %s891_s13 = sphi %s962_s13, %s1211_s13  }
   0x4   : > { %s987_s19 = sadd.s32 1, %s903_s16   ;;  %s245_s20 = sadd.s32 1, %s899_s15 }
   0x5   : > { %s242_s21 = ssub.s32 %s903_s16, %s987_s19  ;;  %p255_p0 = scmp.ne.s32.totalorder %s899_s15, %s895_s14 }
   0x6   : > { %p243_p1 = scmp.eq.s32.totalorder %s242_s21, 0  ;;  %p256_p2 = scmp.eq.s32.totalorder %s983_s17, 1 }
   0x7   : > { %p261_p3 = scmp.ne.s32.totalorder %s895_s14, %s891_s13  ;;  %p262_p4 = scmp.eq.s32.totalorder %s766_s18, 1 }
   0x8   : > { %s998_s22 = scalar_select %p243_p1, %s899_s15, %s245_s20  }
   0x9   : > { %p1000_p5 = por %p256_p2, %p255_p0  ;;  %p1004_p6 = por %p262_p4, %p261_p3 }
   0xa   : > { %1207 = sst [smem:[#allocation5_spill]] %s998_s22  ;;  %p769_p7 = scmp.ge.s32.totalorder %s903_s16, 1 }
   0xb   : > { %p315_p8 = scmp.lt.s32.totalorder %s903_s16, 3 }
   0xd   : > { %p316_p9 = pnand %p769_p7, %p315_p8 }
   0xe   : > { %p353_p10 = scmp.lt.s32.totalorder (!%p316_p9), %s983_s17, 1  ;;  %s789_s30 = sshll.u32 (!%p316_p9), %s983_s17, 3 }
   0xf   : > { %319 = sbr.rel (%p316_p9) target bundleno = 746 (0x2ea), region = 60  ;;  %s702_s20 = scalar_lea.hbm (!%p316_p9), %s1206_s10, %s789_s30 }
  0x10   : > { %s861_s30 = scalar_lea.hbm (!%p316_p9), %s1206_s10, 16 }
  0x14   : > { %v374_v0 = vld [vmem:[%s1197_s1 + $0x78] sm:$0xff]  ;;  %v373_v2 = vld [vmem:[%s1197_s1 + $0x70] sm:$0xff]  ;;  %v372_v4 = vld [vmem:[%s1197_s1 + $0x68] sm:$0xff]  ;;  %s354_s26 = scalar_select %p353_p10, %s983_s17, 1  ;;  %v905_v36 = vmov 0   ;;  %vm447_vm0 = vcmask 1043456  }
  0x15   : > { %v390_v1 = vld [vmem:[%s1197_s1 + $0xf8] sm:$0xff]  ;;  %397 = vmatpush.msra.mxu0 %v374_v0  ;;  %v389_v3 = vld [vmem:[%s1197_s1 + $0xf0] sm:$0xff]  ;;  %v388_v5 = vld [vmem:[%s1197_s1 + $0xe8] sm:$0xff]  ;;  %831 = vset.pattern.permute.xlu0 %v905_v36  ;;  %vm443_vm1 = vcmask 31744   ;;  %vm488_vm2 = vcmask 64512   ;;  %vm586_vm7 = vcmask 130048  }
  0x16   : > { %417 = vmatpush.msra.mxu1 %v390_v1  ;;  %v371_v6 = vld [vmem:[%s1197_s1 + $0x60] sm:$0xff]  ;;  %s788_s11 = sshll.u32 %s354_s26, 3  ;;  %v370_v8 = vld [vmem:[%s1197_s1 + $0x58] sm:$0xff]  ;;  %v369_v10 = vld [vmem:[%s1197_s1 + $0x50] sm:$0xff]  ;;  %832 = vset.pattern.permute.xlu1 %v905_v36  ;;  %s350_s26 = sand.u32 1, %s895_s14  }
  0x17   : > { %398 = vmatpush.msra.mxu0 %v373_v2  ;;  %v387_v7 = vld [vmem:[%s1197_s1 + $0xe0] sm:$0xff]  ;;  %v386_v9 = vld [vmem:[%s1197_s1 + $0xd8] sm:$0xff]  ;;  %s357_s28 = scalar_lea.vmem %s1196_s0, %s788_s11  ;;  %v385_v11 = vld [vmem:[%s1197_s1 + $0xd0] sm:$0xff]  ;;  %s706_s11 = sshll.u32 %s702_s20, 4  ;;  %s707_s11 = int_to_ptr.hbm [resolvable:$true] %s706_s11 }
  0x18   : > { %418 = vmatpush.msra.mxu1 %v389_v3  ;;  %v368_v12 = vld [vmem:[%s1197_s1 + $0x48] sm:$0xff]  ;;  %v1057_v14 = vld [vmem:[%s357_s28] sm:$0xff]  ;;  %v366_v17 = vld [vmem:[%s1197_s1 + $0x38] sm:$0xff]  ;;  %s906_s28 = smov 112   ;;  %s691_s17 = scalar_lea.sflag [#allocation3], %s350_s26 }
  0x19   : > { %399 = vmatpush.msra.mxu0 %v372_v4  ;;  %v384_v13 = vld [vmem:[%s1197_s1 + $0xc8] sm:$0xff]  ;;  %392 = vst [vmem:[#allocation1] ss:$2 sm:$0xff] %v1057_v14  ;;  %v367_v15 = vld [vmem:[%s1197_s1 + $0x40] sm:$0xff]  ;;  %v382_v18 = vld [vmem:[%s1197_s1 + $0xb8] sm:$0xff]  ;;  %s855_s25 = sshra.s32 %s707_s11, 4  ;;  %s856_s25 = int_to_ptr.hbm [resolvable:$true] %s855_s25 }
  0x1a   : > { %419 = vmatpush.msra.mxu1 %v388_v5  ;;  %v383_v16 = vld [vmem:[%s1197_s1 + $0xc0] sm:$0xff]  ;;  %v365_v19 = vld [vmem:[%s1197_s1 + $0x30] sm:$0xff]  ;;  %v364_v21 = vld [vmem:[%s1197_s1 + $0x28] sm:$0xff]  ;;  %s857_s27 = scalar_lea.hbm %s856_s25, 8  ;;  %p862_p0 = scmp.lt.s32.totalorder %s856_s25, %s1206_s10 }
  0x1b   : > { %400 = vmatpush.msra.mxu0 %v371_v6  ;;  %v381_v20 = vld [vmem:[%s1197_s1 + $0xb0] sm:$0xff]  ;;  %v380_v22 = vld [vmem:[%s1197_s1 + $0xa8] sm:$0xff]  ;;  %v363_v23 = vld [vmem:[%s1197_s1 + $0x20] sm:$0xff]  ;;  %p858_p11 = scmp.ne.s32.totalorder %s856_s25, %s857_s27  ;;  %p863_p1 = scmp.lt.s32.totalorder %s861_s30, %s857_s27 }
  0x1c   : > { %420 = vmatpush.msra.mxu1 %v387_v7  ;;  %v379_v24 = vld [vmem:[%s1197_s1 + $0xa0] sm:$0xff]  ;;  %v362_v25 = vld [vmem:[%s1197_s1 + $0x18] sm:$0xff]  ;;  %v361_v27 = vld [vmem:[%s1197_s1 + $0x10] sm:$0xff] }
  0x1d   : > { %401 = vmatpush.msra.mxu0 %v370_v8  ;;  %v378_v26 = vld [vmem:[%s1197_s1 + $0x98] sm:$0xff]  ;;  %v377_v28 = vld [vmem:[%s1197_s1 + $0x90] sm:$0xff]  ;;  %v360_v29 = vld [vmem:[%s1197_s1 + $0x8] sm:$0xff]  ;;  %p859_p12 = pnand %p858_p11, %p1000_p5  ;;  %p864_p2 = por %p863_p1, %p862_p0 }
  0x1e   : > { %421 = vmatpush.msra.mxu1 %v386_v9  ;;  %v376_v30 = vld [vmem:[%s1197_s1 + $0x88] sm:$0xff]  ;;  %v359_v31 = vld [vmem:[%s1197_s1] sm:$0xff]  ;;  %v585_v2 = vld [vmem:[%s1204_s8 + $0x18] sm:$0xff] }
  0x1f   : > { %402 = vmatpush.msra.mxu0 %v369_v10  ;;  %v375_v32 = vld [vmem:[%s1197_s1 + $0x80] sm:$0xff]  ;;  %v584_v6 = vld [vmem:[%s1204_s8 + $0x10] sm:$0xff]  ;;  %v583_v7 = vld [vmem:[%s1204_s8 + $0x8] sm:$0xff]  ;;  %p860_p13 = pneg %p859_p12 }
  0x20   : > { %422 = vmatpush.msra.mxu1 %v385_v11  ;;  %v393_v33 = vld.sshfl [vmem:[#allocation1] sm:$0xff pattern:$0x75316420]  ;;  %v394_v34 = vld.sshfl [vmem:[#allocation1 + $0x8] sm:$0xff pattern:$0x75316420] }
  0x21   : > { %403 = vmatpush.msra.mxu0 %v368_v12  ;;  %v438_v35 = vld [vmem:[%s1199_s3] sm:$0xff]  ;;  %v632_v11 = vld [vmem:[%s1205_s9 + $0x10] sm:$0xff]  ;;  %v633_v12 = vld [vmem:[%s1205_s9 + $0x18] sm:$0xff]  ;;  %p865_p3 = pnand %p864_p2, %p860_p13 }
  0x22   : > { %423 = vmatpush.msra.mxu1 %v384_v13  ;;  %474 = vperm.xlu0 %831, %v438_v35   ;;  %v437_v40 = vld [vmem:[%s1198_s2] sm:$0xff] }
  0x23   : > { %404 = vmatpush.msra.mxu0 %v367_v15  ;;  %v439_v50 = vld [vmem:[%s1200_s4] sm:$0xf]  ;;  %v631_v15 = vld [vmem:[%s1205_s9 + $0x8] sm:$0xff] }
  0x24   : > { %424 = vmatpush.msra.mxu1 %v383_v16  ;;  %v440_v51 = vld [vmem:[%s1201_s5] sm:$0xf] }
  0x25   : > { %405 = vmatpush.msra.mxu0 %v366_v17  ;;  %485 = vperm.xlu1 %832, %v440_v51   ;;  %v442_v52 = vld [vmem:[%s1203_s7] sm:$0xf] }
  0x26   : > { %425 = vmatpush.msra.mxu1 %v382_v18  ;;  %v441_v53 = vld [vmem:[%s1202_s6] sm:$0xf] }
  0x27   : > { %406 = vmatpush.msra.mxu0 %v365_v19  ;;  %v582_v10 = vld [vmem:[%s1204_s8] sm:$0xff] }
  0x28   : > { %426 = vmatpush.msra.mxu1 %v381_v20  ;;  %v630_v13 = vld [vmem:[%s1205_s9] sm:$0xff] }
  0x29   : > { %407 = vmatpush.msra.mxu0 %v364_v21 }
  0x2a   : > { %427 = vmatpush.msra.mxu1 %v380_v22 }
  0x2b   : > { %408 = vmatpush.msra.mxu0 %v363_v23 }
  0x2c   : > { %428 = vmatpush.msra.mxu1 %v379_v24 }
  0x2d   : > { %409 = vmatpush.msra.mxu0 %v362_v25  ;;  %533 = vperm.xlu1 %832, %v442_v52  }
  0x2e   : > { %429 = vmatpush.msra.mxu1 %v378_v26 }
  0x2f   : > { %410 = vmatpush.msra.mxu0 %v361_v27 }
  0x30   : > { %430 = vmatpush.msra.mxu1 %v377_v28 }
  0x31   : > { %411 = vmatpush.msra.mxu0 %v360_v29 }
  0x32   : > { %431 = vmatpush.msra.mxu1 %v376_v30 }
  0x33   : > { %412 = vmatpush.msra.mxu0 %v359_v31 }
  0x34   : > { %432 = vmatpush.msra.mxu1 %v375_v32  ;;  %413 = vmatmul.f32.vlgmr.msra.gmra.mxu0 %v393_v33 }
  0x35   : > { %433 = vmatmul.f32.vlgmr.msra.gmra.mxu1 %v394_v34 }
  0x94   : > { %v475_v42 = vpop.permute.xlu0 %474 }
  0x97   : > { %v486_v56 = vpop.permute.xlu1 %485 }
  0x9f   : > { %v534_v16 = vpop.permute.xlu1 %533 }
  0xb1   : > { %v414_v37 = vpop.f32.mrf.mxu0 }
  0xb2   : > { %v434_v38 = vpop.f32.mrf.mxu1 }
  0xb3   : > { %v435_v39 = vadd.f32 %v434_v38, %v414_v37 }
  0xb5   : > { %773 = vmatpush.msk.msra.mxu2 %vm447_vm0, %v435_v39 }
  0xb6   : > { %774 = vmatmul.msk.f32.vlgmr.msra.gmra.mxu2 %vm443_vm1, %v437_v40 }
 0x139   : > { %v468_v41 = vpop.f32.mrf.mxu2 }
 0x13a   : > { %v471_v43 = vmul.f32 0.0625, %v468_v41 }
 0x13c   : > { %v477_v44 = vadd.f32 %v475_v42, %v471_v43 }
 0x13e   : > { %v478_v45 = vadd.f32 3.0, %v477_v44 }
 0x140   : > { %v479_v46 = vmax.f32 %v478_v45, 0.0 }
 0x142   : > { %v480_v47 = vmin.f32 %v479_v46, 6.0 }
 0x144   : > { %v481_v48 = vmul.f32 0.16666667, %v480_v47 }
 0x146   : > { %v482_v49 = vmul.f32 %v481_v48, %v477_v44 }
 0x148   : > { %537 = vrot.lane.b32.xlu0 %v482_v49, %s906_s28  ;;  %507 = vmatpush.msra.mxu3 %v482_v49  ;;  %s770_s28 = sshll.u32 %s350_s26, 3 }
 0x149   : > { %775 = vmatmul.msk.f32.vlgmr.msra.gmra.mxu3 %vm488_vm2, %v439_v50  ;;  %s352_s21 = scalar_lea.vmem [#allocation2], %s770_s28 }
 0x14a   : > { %604 = vmatpush.msrb.mxu3 %v584_v6  ;;  %s704_s22 = sshll.u32 %s352_s21, 4  ;;  %s705_s22 = int_to_ptr.vmem [resolvable:$true] %s704_s22 }
 0x14c   : > { %605 = vmatpush.msrb.mxu3 %v582_v10 }
 0x14e   : > { %651 = vmatpush.msra.mxu3 %v632_v11 }
 0x150   : > { %652 = vmatpush.msra.mxu3 %v630_v13 }
 0x1ba   : > { %v538_v54 = vpop.permute.xlu0 %537 }
 0x1bb   : > { %558 = vmatpush.msrb.mxu2 %v538_v54 }
 0x1bc   : > { %777 = vmatmul.msk.f32.vlgmr.msrb.gmra.mxu2 %vm488_vm2, %v441_v53 }
 0x1bd   : > { %624 = vmatpush.msra.mxu2 %v585_v2 }
 0x1bf   : > { %625 = vmatpush.msra.mxu2 %v583_v7 }
 0x1c1   : > { %671 = vmatpush.msrb.mxu2 %v633_v12 }
 0x1c3   : > { %672 = vmatpush.msrb.mxu2 %v631_v15 }
 0x1cc   : > { %v509_v55 = vpop.f32.mrf.mxu3 }
 0x1cd   : > { %v510_v57 = vadd.f32 %v509_v55, %v486_v56 }
 0x1cf   : > { %v776_v58 = vmul.f32 -1.442695, %v510_v57 }
 0x1d1   : > { %833 = vpow2.f32 %v776_v58 }
 0x1d7   : > { %v834_v59 = vpop.eup %833 }
 0x1d8   : > { %v515_v60 = vadd.f32 1.0, %v834_v59 }
 0x1da   : > { %835 = vrcp.f32 %v515_v60  ;;  %v527_v1 = vand.u32 2147483648, %v515_v60  ;;  %vm521_vm3 = vweird.f32 %v515_v60  ;;  %v525_v4 = vand.u32 2147483647, %v515_v60 }
 0x1dc   : > { %v528_v5 = vor.u32 1.1754944e-38, %v527_v1  ;;  %vm526_vm6 = vcmp.eq.f32.partialorder %v525_v4, 8.507059e+37 }
 0x1e0   : > { %v836_v61 = vpop.eup %835 }
 0x1e1   : > { %v517_v62 = vmul.f32 %v836_v61, %v515_v60  ;;  %vm522_vm4 = vweird.f32 %v836_v61 }
 0x1e2   : > { %vm523_vm5 = vmor %vm521_vm3, %vm522_vm4 }
 0x1e3   : > { %v518_v63 = vsub.f32 1.0, %v517_v62 }
 0x1e5   : > { %v519_v0 = vmul.f32 %v836_v61, %v518_v63 }
 0x1e7   : > { %v520_v3 = vadd.f32 %v836_v61, %v519_v0 }
 0x1e9   : > { %v524_v8 = vsel %vm523_vm5, %v836_v61, %v520_v3 }
 0x1ea   : > { %v529_v9 = vsel %vm526_vm6, %v528_v5, %v524_v8 }
 0x1eb   : > { %780 = vmatmul.msk.f32.vlgmr.msra.gmra.mxu2 %vm586_vm7, %v529_v9  ;;  %779 = vmatmul.msk.f32.vlgmr.msrb.gmra.mxu3 %vm586_vm7, %v529_v9 }
 0x23f   : > { %v560_v17 = vpop.f32.mrf.mxu2 }
 0x240   : > { %v561_v18 = vadd.f32 %v560_v17, %v534_v16 }
 0x242   : > { %v778_v19 = vmul.f32 -1.442695, %v561_v18 }
 0x244   : > { %837 = vpow2.f32 %v778_v19 }
 0x24a   : > { %v838_v20 = vpop.eup %837 }
 0x24b   : > { %v566_v21 = vadd.f32 1.0, %v838_v20 }
 0x24d   : > { %839 = vrcp.f32 %v566_v21  ;;  %v578_v25 = vand.u32 2147483648, %v566_v21  ;;  %v576_v27 = vand.u32 2147483647, %v566_v21  ;;  %vm572_vm9 = vweird.f32 %v566_v21 }
 0x24f   : > { %v579_v29 = vor.u32 1.1754944e-38, %v578_v25  ;;  %vm577_vm11 = vcmp.eq.f32.partialorder %v576_v27, 8.507059e+37 }
 0x253   : > { %v840_v22 = vpop.eup %839 }
 0x254   : > { %v568_v23 = vmul.f32 %v840_v22, %v566_v21  ;;  %vm573_vm8 = vweird.f32 %v840_v22 }
 0x255   : > { %vm574_vm10 = vmor %vm572_vm9, %vm573_vm8 }
 0x256   : > { %v569_v24 = vsub.f32 1.0, %v568_v23 }
 0x258   : > { %v570_v26 = vmul.f32 %v840_v22, %v569_v24 }
 0x25a   : > { %v571_v28 = vadd.f32 %v840_v22, %v570_v26 }
 0x25c   : > { %v575_v30 = vsel %vm574_vm10, %v840_v22, %v571_v28 }
 0x25d   : > { %v580_v31 = vsel %vm577_vm11, %v579_v29, %v575_v30 }
 0x25e   : > { %781 = vmatmul.msk.f32.vlgmr.msra.gmra.mxu3 %vm586_vm7, %v580_v31  ;;  %782 = vmatmul.msk.f32.vlgmr.msrb.gmra.mxu2 %vm586_vm7, %v580_v31 }
 0x26e   : > { %v627_v32 = vpop.f32.mrf.mxu2  ;;  %v607_v33 = vpop.f32.mrf.mxu3 }
 0x26f   : > { %v679_v34 = vrot.slane %v627_v32, 4 }
 0x271   : > { %v680_v35 = vsel %vm447_vm0, %v607_v33, %v679_v34 }
 0x272   : > { %v682_v38 = vmul.f32 %v680_v35, %v1057_v14 }
 0x2e1   : > { %v674_v36 = vpop.f32.mrf.mxu2  ;;  %v654_v39 = vpop.f32.mrf.mxu3 }
 0x2e2   : > { %v685_v37 = vrot.slane %v674_v36, 4 }
 0x2e4   : > { %v686_v40 = vsel %vm447_vm0, %v654_v39, %v685_v37 }
 0x2e5   : > { %v688_v41 = vmul.f32 %v686_v40, %v682_v38 }
 0x2e7   : > { %689 = vst [vmem:[%s352_s21] sm:$0xff] %v688_v41 }
 0x2e8   : > { %868 = shalt.err (!%p865_p3)
}
 0x2e9   : > { %790 = dma.vmem_to_hbm [thread:$0]  (%p1000_p5), %s705_s22, 128, %s707_s11, %s691_s17  }
 0x2ea PF: > { %p796_p4 = scmp.ge.s32.totalorder %s903_s16, 2  ;;  %s718_s26 = sand.u32 1, %s891_s13  }
 0x2eb   : > { %s719_s20 = scalar_lea.sflag [#allocation3], %s718_s26 }
 0x2ec   : > { %p793_p7 = pnand %p796_p4, %p1004_p6 }
 0x2ee   : > { %p794_p8 = pneg %p793_p7 }
 0x2f0   : > { %886 = dma.done.wait (%p794_p8), %s719_s20, 128  }
 0x2f1   : > { %888 = vsyncadd (%p794_p8), %s719_s20, 4294967168  ;;  %s1210_s21 = sld [smem:[#allocation5_spill]]  ;;  %p20_p9 = scmp.ge.s32.totalorder %s987_s19, 4  }
 0x2f2   : > { %s1211_s13 = smov %s895_s14  ;;  %s1212_s14 = smov %s899_s15 }
 0x2f3   : > { %s1214_s16 = smov %s987_s19  ;;  %22 = sbr.rel (!%p20_p9) target bundleno = 3 (0x3), region = 95 }
 0x2f7   : > { %s1213_s15 = smov %s1210_s21 }
 0x2f8   :  { %725 = vsyncpa [#allocation3], 1 }
 0x2f9   :  { %727 = vsyncpa [#allocation3 + $0x1], 1 }

</bundles_post_ra>
